<compile_context>
chip_gen: v6e
topology: v6e:2x2x1
jax: 0.10.0
libtpu: 0.0.40
codegen_flags: <defaults>
</compile_context>

<pallas_src>
import jax
import jax.numpy as jnp
from jax.experimental import pallas as pl
from jax.experimental.pallas import tpu as pltpu


_LANE = 128           # vreg lane width: last dim is a multiple of 128 -> unmasked vst
_MAX_TILE_ROWS = 4096  # (4096,128) f32 = 2 MiB/tile; 2 in + 2 out buffers = 8 MiB (< v5e 16 MiB)
_MIN_GRID_STEPS = 4    # keep >=4 tiles so double-buffering + both v7x TCs stay fed
_SMALL_BATCH = 8192    # below this, fused XLA elementwise beats kernel dispatch overhead


def _round_up(a, m):
    return -(-a // m) * m


def _logreg_kernel(wb_ref, x_ref, o_ref):
    # wb_ref: (2,) f32 in SMEM -> [weight, bias]; x_ref / o_ref: (tile_r, 128) VMEM tiles.
    w = wb_ref[0]
    b = wb_ref[1]
    z = x_ref[...] * w + b                     # Linear(1,1): scale + shift (VPU)
    # Exact sigmoid: exp lands on the EUP slot, divide is exact.  HBM-bound -> free.
    o_ref[...] = 1.0 / (1.0 + jnp.exp(-z))


def logistic_regression_forward(x, w, b):
    """y = sigmoid(x @ w.T + b) for x: (N, 1) f32, w: (1, 1), b: (1,) or (1, 1)."""
    n = x.shape[0]
    w_s = jnp.reshape(w, ()).astype(jnp.float32)
    b_s = jnp.reshape(b, ()).astype(jnp.float32)

    if n < _SMALL_BATCH:
        # Small batches: a fused XLA elementwise op is strictly faster than a kernel launch.
        return jax.nn.sigmoid(x.astype(jnp.float32) * w_s + b_s)

    x_flat = jnp.reshape(x.astype(jnp.float32), (-1,))
    if n % _LANE == 0:
        # Copy-free path: (N,1)->(rows,128) is a pure bitcast; no pad, no trailing slice copy.
        padded_n = n
    else:
        # Ragged N: pad only up to the next multiple of 8*128 (sublane-aligned rows,
        # <=1023 wasted elements).  The padded tail is computed and sliced off below.
        padded_n = _round_up(n, 8 * _LANE)
        x_flat = jnp.pad(x_flat, (0, padded_n - n))
    rows = padded_n // _LANE
    x2d = jnp.reshape(x_flat, (rows, _LANE))

    # Tile rows: as big as possible (up to 2 MiB tiles) while keeping >= _MIN_GRID_STEPS
    # grid steps; cdiv grid masks the partial last block instead of padding rows.
    tile_r = min(_MAX_TILE_ROWS, max(8, _round_up(pl.cdiv(rows, _MIN_GRID_STEPS), 8)))
    grid = (pl.cdiv(rows, tile_r),)

    wb = jnp.stack([w_s, b_s])                 # single (2,) SMEM scalar array

    y2d = pl.pallas_call(
        _logreg_kernel,
        out_shape=jax.ShapeDtypeStruct((rows, _LANE), jnp.float32),
        grid=grid,
        in_specs=[
            pl.BlockSpec(memory_space=pltpu.MemorySpace.SMEM),   # wb: whole (2,) array in SMEM
            pl.BlockSpec((tile_r, _LANE), lambda i: (i, 0)),     # x tiles, auto double-buffered
        ],
        out_specs=pl.BlockSpec((tile_r, _LANE), lambda i: (i, 0)),
        compiler_params=pltpu.CompilerParams(
            dimension_semantics=("parallel",),   # shard batch tiles across v7x's 2 TensorCores
        ),
        cost_estimate=pl.CostEstimate(
            flops=4 * padded_n,
            transcendentals=padded_n,
            bytes_accessed=2 * padded_n * 4,
        ),
    )(wb, x2d)

    y_flat = jnp.reshape(y2d, (-1,))
    if padded_n != n:
        y_flat = y_flat[:n]
    return jnp.reshape(y_flat, (n, 1))


if __name__ == "__main__":
    key = jax.random.PRNGKey(0)
    kx_small, kx_aligned, kx_ragged, kw, kb = jax.random.split(key, 5)

    # torch.nn.Linear(1, 1) init: weight (1,1), bias (1,), both ~ U(-1/sqrt(1), 1/sqrt(1)).
    w = jax.random.uniform(kw, (1, 1), jnp.float32, minval=-1.0, maxval=1.0)
    b = jax.random.uniform(kb, (1,), jnp.float32, minval=-1.0, maxval=1.0)

    def ref(xv):
        return jax.nn.sigmoid(xv @ w.T + b)

    # 1) Small batch (matches the module's typical (N, 1) toy input) -> fused XLA path.
    x_small = jax.random.normal(kx_small, (8, 1), jnp.float32)
    y_small = jax.block_until_ready(logistic_regression_forward(x_small, w, b))
    assert y_small.shape == (8, 1)
    assert jnp.allclose(y_small, ref(x_small), atol=1e-6)

    # 2) 128-aligned batch -> copy-free Pallas path (pure bitcast reshape, no pad/slice).
    n_aligned = 131072
    x_aligned = jax.random.normal(kx_aligned, (n_aligned, 1), jnp.float32)
    y_aligned = jax.block_until_ready(logistic_regression_forward(x_aligned, w, b))
    assert y_aligned.shape == (n_aligned, 1)
    err_a = float(jnp.max(jnp.abs(y_aligned - ref(x_aligned))))
    assert jnp.allclose(y_aligned, ref(x_aligned), atol=1e-5), err_a

    # 3) Ragged batch -> Pallas path with minimal (<=1023-elem) pad + masked last block.
    n_ragged = 100_000  # deliberately not a multiple of 128
    x_ragged = jax.random.normal(kx_ragged, (n_ragged, 1), jnp.float32)
    y_ragged = jax.block_until_ready(logistic_regression_forward(x_ragged, w, b))
    assert y_ragged.shape == (n_ragged, 1)
    err_r = float(jnp.max(jnp.abs(y_ragged - ref(x_ragged))))
    assert jnp.allclose(y_ragged, ref(x_ragged), atol=1e-5), err_r

    print("KERNEL_OK")
</pallas_src>

<mosaic_0001>
module attributes {stable_mosaic.version = 11 : i64} {
  func.func @_logreg_kernel(%arg0: i32, %arg1: memref<2xf32, #tpu.memory_space<smem>>, %arg2: memref<256x128xf32, #tpu.memory_space<vmem>>, %arg3: memref<256x128xf32, #tpu.memory_space<vmem>>) attributes {dimension_semantics = [#tpu.dimension_semantics<parallel>], iteration_bounds = array<i64: 4>, scalar_prefetch = 0 : i64, scratch_operands = 0 : i64, tpu.core_type = #tpu.core_type<tc>, window_params = [{transform_indices = @transform_0, window_bounds = array<i64: 2>}, {transform_indices = @transform_1, window_bounds = array<i64: 256, 128>}, {transform_indices = @transform_2, window_bounds = array<i64: 256, 128>}]} {
    %c0 = arith.constant 0 : index
    %0 = memref.load %arg1[%c0] : memref<2xf32, #tpu.memory_space<smem>>
    %c1 = arith.constant 1 : index
    %1 = memref.load %arg1[%c1] : memref<2xf32, #tpu.memory_space<smem>>
    %c0_0 = arith.constant 0 : index
    %c0_1 = arith.constant 0 : index
    %2 = vector.load %arg2[%c0_0, %c0_1] : memref<256x128xf32, #tpu.memory_space<vmem>>, vector<256x128xf32>
    %3 = vector.broadcast %0 : f32 to vector<256x128xf32>
    %4 = arith.mulf %2, %3 : vector<256x128xf32>
    %5 = vector.broadcast %1 : f32 to vector<256x128xf32>
    %6 = arith.addf %4, %5 : vector<256x128xf32>
    %cst = arith.constant 0.000000e+00 : f32
    %7 = vector.broadcast %cst : f32 to vector<256x128xf32>
    %8 = arith.subf %7, %6 : vector<256x128xf32>
    %9 = math.exp %8 : vector<256x128xf32>
    %cst_2 = arith.constant 1.000000e+00 : f32
    %10 = vector.broadcast %cst_2 : f32 to vector<256x128xf32>
    %11 = arith.addf %10, %9 : vector<256x128xf32>
    %cst_3 = arith.constant 1.000000e+00 : f32
    %12 = vector.broadcast %cst_3 : f32 to vector<256x128xf32>
    %13 = arith.divf %12, %11 : vector<256x128xf32>
    %c0_4 = arith.constant 0 : index
    %c0_5 = arith.constant 0 : index
    %14 = vector.load %arg3[%c0_4, %c0_5] : memref<256x128xf32, #tpu.memory_space<vmem>>, vector<256x128xf32>
    tpu.vector_store %arg3[%c0_4, %c0_5], %13 {strides = array<i32>} : memref<256x128xf32, #tpu.memory_space<vmem>>, vector<256x128xf32>,
    return
  }
  func.func @transform_0(%arg0: i32) -> i32 {
    %c0_i32 = arith.constant 0 : i32
    %c0_i32_0 = arith.constant 0 : i32
    return %c0_i32 : i32
  }
  func.func @transform_1(%arg0: i32) -> (i32, i32) {
    %c0_i32 = arith.constant 0 : i32
    %c0_i32_0 = arith.constant 0 : i32
    return %arg0, %c0_i32 : i32, i32
  }
  func.func @transform_2(%arg0: i32) -> (i32, i32) {
    %c0_i32 = arith.constant 0 : i32
    %c0_i32_0 = arith.constant 0 : i32
    return %arg0, %c0_i32 : i32, i32
  }
}

</mosaic_0001>

<bundles_post_ra>
// kernel: tpu_custom_call.1
= control target key start
LH: loop header
LB: loop body
LE: loop exit
PB: predicated region body
PF: predicated region fallthrough
CT: control target
= control target key end

     0   :  { %7 = vsyncpa [#allocation5], 0  ;;  %s1262_s0 = inlined_call_operand.hbm [shape: f32[2], index: 0, kind: input, shape index: {}]   ;;  %s1263_s1 = inlined_call_operand.hbm [shape: f32[1024,128], index: 1, kind: input, shape index: {}]   ;;  %s1264_s2 = inlined_call_operand.hbm [shape: f32[1024,128], index: 2, kind: output, shape index: {}]  }
   0x1   :  { %8 = vsyncpa [#allocation3], 0 }
   0x2   :  { %10 = vsyncpa [#allocation3 + $0x1], 0 }
   0x3   :  { %11 = vsyncpa [#allocation4], 0 }
   0x4   :  { %13 = vsyncpa [#allocation4 + $0x1], 0  ;;  %s938_s9 = smov 0   ;;  %s940_s10 = smov 0  }
   0x5   :  { %s942_s11 = smov 0   ;;  %s944_s12 = smov 0  }
   0x6 LB: > { %s959_s13 = sadd.s32 4294967295, %s914_s12   ;;  %s599_s14 = sadd.s32 4294967294, %s914_s12   ;;  %s914_s12 = sphi %s944_s12, %s1284_s12   ;;  %s910_s11 = sphi %s942_s11, %s1283_s11   ;;  %s906_s10 = sphi %s940_s10, %s1282_s10   ;;  %s902_s9 = sphi %s938_s9, %s1281_s9  }
   0x7   : > { %s963_s15 = sadd.s32 1, %s914_s12   ;;  %s47_s16 = sadd.s32 1, %s910_s11 }
   0x8   : > { %s44_s17 = ssub.s32 %s914_s12, %s963_s15  ;;  %p54_p0 = scmp.ne.s32.totalorder %s910_s11, %s906_s10 }
   0x9   : > { %p45_p1 = scmp.eq.s32.totalorder %s44_s17, 0  ;;  %p55_p2 = scmp.eq.s32.totalorder %s914_s12, 0 }
   0xa   : > { %p60_p3 = scmp.ne.s32.totalorder %s906_s10, %s902_s9  ;;  %p1266_p4 = scmp.eq.s32.totalorder %s959_s13, 0 }
   0xb   : > { %s975_s18 = scalar_select %p45_p1, %s910_s11, %s47_s16  }
   0xc   : > { %p977_p5 = por %p55_p2, %p54_p0  ;;  %p983_p6 = por %p1266_p4, %p60_p3 }
   0xd   : > { %p84_p7 = scmp.eq.s32.totalorder %s959_s13, 3  ;;  %p90_p8 = scmp.eq.s32.totalorder %s599_s14, 3 }
   0xe   : > { %s1270_s20 = scalar_select %p983_p6, 1, 0 }
   0xf   : > { %p600_p9 = scmp.ge.s32.totalorder %s914_s12, 1  ;;  %p97_p10 = scmp.lt.s32.totalorder %s914_s12, 5 }
  0x10   : > { %p990_p11 = por %p84_p7, %p54_p0  ;;  %p994_p12 = por %p90_p8, %p60_p3 }
  0x11   : > { %p998_p13 = pnand %p600_p9, %p97_p10  ;;  %p639_p2 = scmp.lt.s32.totalorder %s914_s12, 4 }
  0x12   : > { %s1271_s21 = scalar_select %p990_p11, 1, 0 }
  0x13   : > { %s1272_s22 = scalar_select %p994_p12, 1, 0 }
  0x14   : > { %s1273_s23 = scalar_select %p998_p13, 1, 0 }
  0x15   : > { %p626_p1 = pneg %p998_p13  ;;  %s119_s24 = sand.u32 1, %s910_s11  }
  0x16   : > { %s616_s25 = sshll.u32 %s914_s12, 12  ;;  %p1011_p0 = pnand %p639_p2, %p977_p5 }
  0x17   : > { %p627_p6 = pnand %p626_p1, %p1266_p4  ;;  %s603_s27 = sshll.u32 %s119_s24, 8 }
  0x18   : > { %s916_s28 = smov [#allocation2]   ;;  %s1021_s5 = scalar_lea.hbm %s1263_s1, %s616_s25 }
  0x19   : > { %629 = dma.hbm_to_smem (!%p627_p6), %s1262_s0, 16, %s916_s28, [#allocation5]  }
  0x1a   : > { %s123_s6 = scalar_lea.vmem [#allocation6], %s603_s27  ;;  %s1025_s8 = scalar_lea.sflag [#allocation3], %s119_s24 }
  0x1b   : > { %s130_s7 = sshll.u32 %s123_s6, 4  ;;  %s818_s14 = scalar_lea.hbm %s1021_s5, 4096  ;;  %s1023_s7 = int_to_ptr.vmem [resolvable:$true] %s130_s7 }
  0x1c   : > { %p819_p3 = scmp.ne.s32.totalorder %s1021_s5, %s818_s14  ;;  %p820_p5 = pneg %p1011_p0 }
  0x1d   : > { %s823_s19 = scalar_lea.hbm %s1263_s1, 16384  ;;  %p824_p8 = scmp.lt.s32.totalorder %s1021_s5, %s1263_s1 }
  0x1e   : > { %p821_p7 = pnand %p820_p5, %p819_p3  ;;  %p825_p9 = scmp.lt.s32.totalorder %s823_s19, %s818_s14 }
  0x20   : > { %p822_p6 = pneg %p821_p7  ;;  %p826_p10 = por %p825_p9, %p824_p8 }
  0x22   : > { %p827_p1 = pnand %p826_p10, %p822_p6 }
  0x24   : > { %830 = shalt.err (!%p827_p1)
}
  0x25   : > { %s831_s24 = scalar_lea.vmem %s1023_s7, 4096  ;;  %s917_s27 = smov [#allocation6]  }
  0x26   : > { %p832_p2 = scmp.ne.s32.totalorder %s1023_s7, %s831_s24  ;;  %s836_s29 = sshll.u32 %s917_s27, 4  ;;  %s837_s29 = int_to_ptr.vmem [resolvable:$false] %s836_s29 }
  0x27   : > { %s838_s30 = scalar_lea.vmem %s837_s29, 8192  ;;  %p839_p7 = scmp.lt.s32.totalorder %s1023_s7, %s837_s29 }
  0x28   : > { %p834_p4 = pnand %p832_p2, %p820_p5  ;;  %p840_p12 = scmp.lt.s32.totalorder %s838_s30, %s831_s24 }
  0x2a   : > { %p835_p3 = pneg %p834_p4  ;;  %p841_p11 = por %p840_p12, %p839_p7 }
  0x2c   : > { %p842_p13 = pnand %p841_p11, %p835_p3 }
  0x2e   : > { %845 = shalt.err (!%p842_p13)
}
  0x2f   : > { %s918_s3 = smov 128   ;;  %s919_s4 = smov 8  }
  0x30   : > { %633 = dma.hbm_to_vmem [thread:$0]  (!%p1011_p0), %s1021_s5, 4096, %s1023_s7, %s1025_s8, %s918_s3, %s918_s3, %s919_s4  }
  0x31   : > { %p1275_p5 = scmp.ne.s32.totalorder %s1273_s23, 0 }
  0x32   : > { %p1276_p4 = scmp.eq.s32.totalorder (!%p1275_p5), %s959_s13, 0 }
  0x33   : > { %142 = sbr.rel (%p1275_p5) target bundleno = 169 (0xa9), region = 28 }
  0x38   : > { %889 = dma.done.wait (%p1276_p4), [#allocation5], 16   ;;  %p1277_p6 = pmov %p1276_p4 }
  0x39   : > { %s1053_s6 = sand.u32 1, %s906_s10   ;;  %p1278_p11 = scmp.ne.s32.totalorder %s1270_s20, 0 }
  0x3a   : > { %891 = vsyncadd (%p1277_p6), [#allocation5], 4294967280  ;;  %s608_s14 = sshll.u32 %s1053_s6, 8  ;;  %s149_s16 = scalar_lea.sflag [#allocation3], %s1053_s6 }
  0x3b   : > { %s1059_s26 = scalar_lea.vmem [#allocation6], %s608_s14 }
  0x3c   : > { %893 = dma.done.wait (%p1278_p11), %s149_s16, 4096  }
  0x3d   : > { %895 = vsyncadd (%p1278_p11), %s149_s16, 4294963200 }
  0x3e   : > { %157 = sfence }
  0x3f   : > { %s176_s23 = sld [smem:[#allocation2]]  ;;  %v178_v0 = vld [vmem:[%s1059_s26] sm:$0xff]  ;;  %v179_v1 = vld [vmem:[%s1059_s26 + $0x8] sm:$0xff]  ;;  %v180_v2 = vld [vmem:[%s1059_s26 + $0x10] sm:$0xff]  ;;  %s1163_s20 = scalar_lea.vmem [#allocation7], %s608_s14 }
  0x40   : > { %s610_s5 = sld [smem:[#allocation2 + $0x1]]  ;;  %v181_v3 = vld [vmem:[%s1059_s26 + $0x18] sm:$0xff]  ;;  %v182_v4 = vld [vmem:[%s1059_s26 + $0x20] sm:$0xff]  ;;  %v183_v5 = vld [vmem:[%s1059_s26 + $0x28] sm:$0xff]  ;;  %s617_s7 = sshll.u32 %s959_s13, 12 }
  0x41   : > { %v184_v6 = vld [vmem:[%s1059_s26 + $0x30] sm:$0xff]  ;;  %v185_v8 = vld [vmem:[%s1059_s26 + $0x38] sm:$0xff]  ;;  %v186_v25 = vld [vmem:[%s1059_s26 + $0x40] sm:$0xff]  ;;  %s514_s8 = sshll.u32 %s1163_s20, 4  ;;  %s1215_s25 = scalar_lea.hbm %s1264_s2, %s617_s7  ;;  %s1217_s8 = int_to_ptr.vmem [resolvable:$true] %s514_s8 }
  0x42   : > { %v187_v30 = vld [vmem:[%s1059_s26 + $0x48] sm:$0xff]  ;;  %v188_v31 = vld [vmem:[%s1059_s26 + $0x50] sm:$0xff]  ;;  %v189_v36 = vld [vmem:[%s1059_s26 + $0x58] sm:$0xff]  ;;  %s501_s13 = scalar_lea.sflag [#allocation4], %s1053_s6  ;;  %s846_s28 = scalar_lea.vmem %s1217_s8, 4096 }
  0x43   : > { %v190_v37 = vld [vmem:[%s1059_s26 + $0x60] sm:$0xff]  ;;  %v191_v52 = vld [vmem:[%s1059_s26 + $0x68] sm:$0xff]  ;;  %v192_v59 = vld [vmem:[%s1059_s26 + $0x70] sm:$0xff]  ;;  %p847_p12 = scmp.ne.s32.totalorder %s1217_s8, %s846_s28  ;;  %p1279_p13 = scmp.ne.s32.totalorder %s1271_s21, 0 }
  0x44   : > { %v193_v63 = vld [vmem:[%s1059_s26 + $0x78] sm:$0xff]  ;;  %s920_s24 = smov [#allocation7]  }
  0x45   : > { %v1072_v7 = vstv %s176_s23  ;;  %p848_p0 = pnand %p847_p12, %p1279_p13  ;;  %s850_s27 = sshll.u32 %s920_s24, 4  ;;  %s851_s27 = int_to_ptr.vmem [resolvable:$false] %s850_s27 }
  0x46   : > { %v211_v9 = vmul.f32 %v1072_v7, %v178_v0  ;;  %v1076_v10 = vstv %s610_s5  ;;  %v212_v11 = vmul.f32 %v1072_v7, %v179_v1  ;;  %v213_v12 = vmul.f32 %v1072_v7, %v180_v2  ;;  %s852_s29 = scalar_lea.vmem %s851_s27, 8192  ;;  %p853_p9 = scmp.lt.s32.totalorder %s1217_s8, %s851_s27 }
  0x47   : > { %v214_v13 = vmul.f32 %v1072_v7, %v181_v3  ;;  %v215_v14 = vmul.f32 %v1072_v7, %v182_v4  ;;  %v216_v15 = vmul.f32 %v1072_v7, %v183_v5  ;;  %v217_v16 = vmul.f32 %v1072_v7, %v184_v6  ;;  %v194_v6 = vld [vmem:[%s1059_s26 + $0x80] sm:$0xff]  ;;  %p849_p8 = pneg %p848_p0  ;;  %p854_p10 = scmp.lt.s32.totalorder %s852_s29, %s846_s28 }
  0x48   : > { %v244_v17 = vadd.f32 %v1076_v10, %v211_v9  ;;  %v245_v18 = vadd.f32 %v1076_v10, %v212_v11  ;;  %v246_v19 = vadd.f32 %v1076_v10, %v213_v12  ;;  %v218_v20 = vmul.f32 %v1072_v7, %v185_v8  ;;  %v195_v8 = vld [vmem:[%s1059_s26 + $0x88] sm:$0xff] }
  0x49   : > { %v247_v21 = vadd.f32 %v1076_v10, %v214_v13  ;;  %v248_v22 = vadd.f32 %v1076_v10, %v215_v14  ;;  %v249_v23 = vadd.f32 %v1076_v10, %v216_v15  ;;  %v250_v24 = vadd.f32 %v1076_v10, %v217_v16  ;;  %v196_v13 = vld [vmem:[%s1059_s26 + $0x90] sm:$0xff]  ;;  %p855_p1 = por %p854_p10, %p853_p9 }
  0x4a   : > { %v276_v26 = vsub.f32 0.0, %v244_v17  ;;  %v277_v27 = vsub.f32 0.0, %v245_v18  ;;  %v278_v28 = vsub.f32 0.0, %v246_v19  ;;  %v251_v29 = vadd.f32 %v1076_v10, %v218_v20  ;;  %v197_v20 = vld [vmem:[%s1059_s26 + $0x98] sm:$0xff] }
  0x4b   : > { %v279_v32 = vsub.f32 0.0, %v247_v21  ;;  %v280_v33 = vsub.f32 0.0, %v248_v22  ;;  %v281_v34 = vsub.f32 0.0, %v249_v23  ;;  %v282_v35 = vsub.f32 0.0, %v250_v24  ;;  %p856_p2 = pnand %p855_p1, %p849_p8 }
  0x4c   : > { %v308_v38 = vmul.f32 1.442695, %v276_v26  ;;  %v310_v39 = vmul.f32 1.442695, %v277_v27  ;;  %v312_v40 = vmul.f32 1.442695, %v278_v28  ;;  %v219_v41 = vmul.f32 %v1072_v7, %v186_v25 }
  0x4d   : > { %v314_v42 = vmul.f32 1.442695, %v279_v32  ;;  %v316_v43 = vmul.f32 1.442695, %v280_v33  ;;  %v318_v44 = vmul.f32 1.442695, %v281_v34  ;;  %v220_v45 = vmul.f32 %v1072_v7, %v187_v30 }
  0x4e   : > { %679 = vpow2.f32 %v308_v38  ;;  %v320_v46 = vmul.f32 1.442695, %v282_v35  ;;  %v283_v47 = vsub.f32 0.0, %v251_v29  ;;  %v252_v48 = vadd.f32 %v1076_v10, %v219_v41  ;;  %v198_v34 = vld [vmem:[%s1059_s26 + $0xa0] sm:$0xff]  ;;  %v199_v41 = vld [vmem:[%s1059_s26 + $0xa8] sm:$0xff] }
  0x4f   : > { %681 = vpow2.f32 %v310_v39  ;;  %v253_v49 = vadd.f32 %v1076_v10, %v220_v45  ;;  %v221_v50 = vmul.f32 %v1072_v7, %v188_v31  ;;  %v222_v51 = vmul.f32 %v1072_v7, %v189_v36 }
  0x50   : > { %683 = vpow2.f32 %v312_v40  ;;  %v322_v53 = vmul.f32 1.442695, %v283_v47  ;;  %v284_v54 = vsub.f32 0.0, %v252_v48  ;;  %v223_v55 = vmul.f32 %v1072_v7, %v190_v37 }
  0x51   : > { %685 = vpow2.f32 %v314_v42  ;;  %v285_v56 = vsub.f32 0.0, %v253_v49  ;;  %v254_v57 = vadd.f32 %v1076_v10, %v221_v50  ;;  %v255_v58 = vadd.f32 %v1076_v10, %v222_v51 }
  0x52   : > { %687 = vpow2.f32 %v316_v43  ;;  %v324_v60 = vmul.f32 1.442695, %v284_v54  ;;  %v256_v61 = vadd.f32 %v1076_v10, %v223_v55  ;;  %v224_v62 = vmul.f32 %v1072_v7, %v191_v52  ;;  %v201_v54 = vld [vmem:[%s1059_s26 + $0xb8] sm:$0xff] }
  0x53   : > { %689 = vpow2.f32 %v318_v44  ;;  %v326_v0 = vmul.f32 1.442695, %v285_v56  ;;  %v286_v1 = vsub.f32 0.0, %v254_v57  ;;  %v287_v2 = vsub.f32 0.0, %v255_v58 }
  0x54   : > { %691 = vpow2.f32 %v320_v46  ;;  %v288_v3 = vsub.f32 0.0, %v256_v61  ;;  %v257_v4 = vadd.f32 %v1076_v10, %v224_v62  ;;  %v225_v5 = vmul.f32 %v1072_v7, %v192_v59  ;;  %v200_v46 = vld [vmem:[%s1059_s26 + $0xb0] sm:$0xff] }
  0x55   : > { %693 = vpow2.f32 %v322_v53  ;;  %v328_v9 = vmul.f32 1.442695, %v286_v1  ;;  %v330_v11 = vmul.f32 1.442695, %v287_v2  ;;  %v226_v12 = vmul.f32 %v1072_v7, %v193_v63 }
  0x56   : > { %695 = vpow2.f32 %v324_v60  ;;  %v332_v14 = vmul.f32 1.442695, %v288_v3  ;;  %v289_v15 = vsub.f32 0.0, %v257_v4  ;;  %v258_v16 = vadd.f32 %v1076_v10, %v225_v5  ;;  %v202_v3 = vld [vmem:[%s1059_s26 + $0xc0] sm:$0xff]  ;;  %v203_v4 = vld [vmem:[%s1059_s26 + $0xc8] sm:$0xff] }
  0x57   : > { %697 = vpow2.f32 %v326_v0  ;;  %v259_v17 = vadd.f32 %v1076_v10, %v226_v12  ;;  %v227_v18 = vmul.f32 %v1072_v7, %v194_v6  ;;  %v228_v19 = vmul.f32 %v1072_v7, %v195_v8 }
  0x58   : > { %699 = vpow2.f32 %v328_v9  ;;  %v334_v21 = vmul.f32 1.442695, %v289_v15  ;;  %v290_v22 = vsub.f32 0.0, %v258_v16  ;;  %v229_v23 = vmul.f32 %v1072_v7, %v196_v13 }
  0x59   : > { %701 = vpow2.f32 %v330_v11  ;;  %v291_v24 = vsub.f32 0.0, %v259_v17  ;;  %v260_v26 = vadd.f32 %v1076_v10, %v227_v18  ;;  %v230_v27 = vmul.f32 %v1072_v7, %v197_v20  ;;  %v204_v11 = vld [vmem:[%s1059_s26 + $0xd0] sm:$0xff]  ;;  %v205_v20 = vld [vmem:[%s1059_s26 + $0xd8] sm:$0xff] }
  0x5a   : > { %703 = vpow2.f32 %v332_v14  ;;  %v336_v25 = vmul.f32 1.442695, %v290_v22  ;;  %v261_v30 = vadd.f32 %v1076_v10, %v228_v19  ;;  %v262_v33 = vadd.f32 %v1076_v10, %v229_v23 }
  0x5b   : > { %v680_v28 = vpop.eup %679  ;;  %705 = vpow2.f32 %v334_v21  ;;  %v338_v29 = vmul.f32 1.442695, %v291_v24  ;;  %v263_v37 = vadd.f32 %v1076_v10, %v230_v27  ;;  %v292_v40 = vsub.f32 0.0, %v260_v26 }
  0x5c   : > { %v682_v31 = vpop.eup %681  ;;  %v372_v32 = vadd.f32 1.0, %v680_v28  ;;  %707 = vpow2.f32 %v336_v25  ;;  %v293_v44 = vsub.f32 0.0, %v261_v30  ;;  %v231_v45 = vmul.f32 %v1072_v7, %v198_v34  ;;  %v207_v34 = vld [vmem:[%s1059_s26 + $0xe8] sm:$0xff] }
  0x5d   : > { %v684_v35 = vpop.eup %683  ;;  %v373_v36 = vadd.f32 1.0, %v682_v31  ;;  %709 = vpow2.f32 %v338_v29  ;;  %v294_v49 = vsub.f32 0.0, %v262_v33  ;;  %v295_v52 = vsub.f32 0.0, %v263_v37  ;;  %v206_v29 = vld [vmem:[%s1059_s26 + $0xe0] sm:$0xff] }
  0x5e   : > { %v686_v38 = vpop.eup %685  ;;  %711 = vrcp.f32 %v372_v32  ;;  %v374_v39 = vadd.f32 1.0, %v684_v35  ;;  %v232_v53 = vmul.f32 %v1072_v7, %v199_v41  ;;  %v264_v57 = vadd.f32 %v1076_v10, %v231_v45 }
  0x5f   : > { %v688_v42 = vpop.eup %687  ;;  %713 = vrcp.f32 %v373_v36  ;;  %v375_v43 = vadd.f32 1.0, %v686_v38  ;;  %v233_v58 = vmul.f32 %v1072_v7, %v200_v46  ;;  %v1137_v61 = vmul.f32 1.442695, %v292_v40 }
  0x60   : > { %v690_v47 = vpop.eup %689  ;;  %715 = vrcp.f32 %v374_v39  ;;  %v376_v48 = vadd.f32 1.0, %v688_v42  ;;  %v1139_v62 = vmul.f32 1.442695, %v293_v44  ;;  %v1141_v1 = vmul.f32 1.442695, %v294_v49  ;;  %v209_v44 = vld [vmem:[%s1059_s26 + $0xf8] sm:$0xff] }
  0x61   : > { %v692_v50 = vpop.eup %691  ;;  %717 = vrcp.f32 %v375_v43  ;;  %v377_v51 = vadd.f32 1.0, %v690_v47  ;;  %v234_v2 = vmul.f32 %v1072_v7, %v201_v54  ;;  %v1146_v8 = vmul.f32 1.442695, %v295_v52  ;;  %v208_v43 = vld [vmem:[%s1059_s26 + $0xf0] sm:$0xff] }
  0x62   : > { %v694_v55 = vpop.eup %693  ;;  %719 = vrcp.f32 %v376_v48  ;;  %v378_v56 = vadd.f32 1.0, %v692_v50  ;;  %v265_v9 = vadd.f32 %v1076_v10, %v232_v53  ;;  %v296_v14 = vsub.f32 0.0, %v264_v57 }
  0x63   : > { %v696_v59 = vpop.eup %695  ;;  %721 = vrcp.f32 %v377_v51  ;;  %v379_v60 = vadd.f32 1.0, %v694_v55  ;;  %v266_v15 = vadd.f32 %v1076_v10, %v233_v58  ;;  %v235_v18 = vmul.f32 %v1072_v7, %v202_v3 }
  0x64   : > { %v698_v63 = vpop.eup %697  ;;  %723 = vrcp.f32 %v378_v56  ;;  %v380_v0 = vadd.f32 1.0, %v696_v59  ;;  %v236_v19 = vmul.f32 %v1072_v7, %v203_v4  ;;  %v267_v23 = vadd.f32 %v1076_v10, %v234_v2 }
  0x65   : > { %v700_v5 = vpop.eup %699  ;;  %725 = vrcp.f32 %v379_v60  ;;  %v381_v6 = vadd.f32 1.0, %v698_v63  ;;  %v237_v24 = vmul.f32 %v1072_v7, %v204_v11  ;;  %v297_v27 = vsub.f32 0.0, %v265_v9 }
  0x66   : > { %v702_v12 = vpop.eup %701  ;;  %727 = vrcp.f32 %v380_v0  ;;  %v382_v13 = vadd.f32 1.0, %v700_v5  ;;  %v268_v28 = vadd.f32 %v1076_v10, %v235_v18  ;;  %v269_v32 = vadd.f32 %v1076_v10, %v236_v19 }
  0x67   : > { %v704_v16 = vpop.eup %703  ;;  %729 = vrcp.f32 %v381_v6  ;;  %v383_v17 = vadd.f32 1.0, %v702_v12  ;;  %v238_v33 = vmul.f32 %v1072_v7, %v205_v20  ;;  %v348_v37 = vmul.f32 1.442695, %v296_v14 }
  0x68   : > { %v706_v21 = vpop.eup %705  ;;  %731 = vrcp.f32 %v382_v13  ;;  %v384_v22 = vadd.f32 1.0, %v704_v16  ;;  %v298_v38 = vsub.f32 0.0, %v266_v15  ;;  %v299_v40 = vsub.f32 0.0, %v267_v23 }
  0x69   : > { %v708_v25 = vpop.eup %707  ;;  %733 = vrcp.f32 %v383_v17  ;;  %v385_v26 = vadd.f32 1.0, %v706_v21  ;;  %v270_v41 = vadd.f32 %v1076_v10, %v237_v24  ;;  %v239_v42 = vmul.f32 %v1072_v7, %v206_v29 }
  0x6a   : > { %v710_v30 = vpop.eup %709  ;;  %735 = vrcp.f32 %v384_v22  ;;  %v386_v31 = vadd.f32 1.0, %v708_v25  ;;  %v350_v46 = vmul.f32 1.442695, %v297_v27  ;;  %v271_v47 = vadd.f32 %v1076_v10, %v238_v33 }
  0x6b   : > { %v712_v35 = vpop.eup %711  ;;  %737 = vrcp.f32 %v385_v26  ;;  %v387_v36 = vadd.f32 1.0, %v710_v30  ;;  %v240_v48 = vmul.f32 %v1072_v7, %v207_v34  ;;  %v300_v50 = vsub.f32 0.0, %v268_v28 }
  0x6c   : > { %v714_v39 = vpop.eup %713  ;;  %468 = vst [vmem:[%s1163_s20] sm:$0xff] %v712_v35  ;;  %739 = vrcp.f32 %v386_v31  ;;  %v301_v51 = vsub.f32 0.0, %v269_v32  ;;  %v272_v52 = vadd.f32 %v1076_v10, %v239_v42  ;;  %v241_v55 = vmul.f32 %v1072_v7, %v208_v43 }
  0x6d   : > { %v716_v45 = vpop.eup %715  ;;  %469 = vst [vmem:[%s1163_s20 + $0x8] sm:$0xff] %v714_v39  ;;  %741 = vrcp.f32 %v387_v36  ;;  %v273_v54 = vadd.f32 %v1076_v10, %v240_v48  ;;  %v242_v56 = vmul.f32 %v1072_v7, %v209_v44  ;;  %v352_v58 = vmul.f32 1.442695, %v298_v38 }
  0x6e   : > { %v718_v49 = vpop.eup %717  ;;  %470 = vst [vmem:[%s1163_s20 + $0x10] sm:$0xff] %v716_v45  ;;  %743 = vpow2.f32 %v1137_v61  ;;  %v354_v59 = vmul.f32 1.442695, %v299_v40  ;;  %v302_v60 = vsub.f32 0.0, %v270_v41  ;;  %v274_v63 = vadd.f32 %v1076_v10, %v241_v55 }
  0x6f   : > { %v720_v53 = vpop.eup %719  ;;  %471 = vst [vmem:[%s1163_s20 + $0x18] sm:$0xff] %v718_v49  ;;  %745 = vpow2.f32 %v1139_v62  ;;  %v303_v62 = vsub.f32 0.0, %v271_v47  ;;  %v275_v0 = vadd.f32 %v1076_v10, %v242_v56  ;;  %v356_v7 = vmul.f32 1.442695, %v300_v50 }
  0x70   : > { %v722_v57 = vpop.eup %721  ;;  %472 = vst [vmem:[%s1163_s20 + $0x20] sm:$0xff] %v720_v53  ;;  %747 = vpow2.f32 %v1141_v1  ;;  %v304_v1 = vsub.f32 0.0, %v272_v52  ;;  %v358_v4 = vmul.f32 1.442695, %v301_v51  ;;  %v305_v5 = vsub.f32 0.0, %v273_v54 }
  0x71   : > { %v724_v61 = vpop.eup %723  ;;  %473 = vst [vmem:[%s1163_s20 + $0x28] sm:$0xff] %v722_v57  ;;  %749 = vpow2.f32 %v1146_v8  ;;  %v360_v8 = vmul.f32 1.442695, %v302_v60  ;;  %v306_v9 = vsub.f32 0.0, %v274_v63  ;;  %v362_v11 = vmul.f32 1.442695, %v303_v62 }
  0x72   : > { %v726_v2 = vpop.eup %725  ;;  %474 = vst [vmem:[%s1163_s20 + $0x30] sm:$0xff] %v724_v61  ;;  %751 = vpow2.f32 %v348_v37  ;;  %v307_v12 = vsub.f32 0.0, %v275_v0  ;;  %v364_v14 = vmul.f32 1.442695, %v304_v1  ;;  %v366_v16 = vmul.f32 1.442695, %v305_v5 }
  0x73   : > { %v728_v3 = vpop.eup %727  ;;  %475 = vst [vmem:[%s1163_s20 + $0x38] sm:$0xff] %v726_v2  ;;  %753 = vpow2.f32 %v350_v46  ;;  %v368_v18 = vmul.f32 1.442695, %v306_v9 }
  0x74   : > { %v730_v6 = vpop.eup %729  ;;  %476 = vst [vmem:[%s1163_s20 + $0x40] sm:$0xff] %v728_v3  ;;  %755 = vpow2.f32 %v352_v58  ;;  %v370_v20 = vmul.f32 1.442695, %v307_v12 }
  0x75   : > { %v732_v10 = vpop.eup %731  ;;  %477 = vst [vmem:[%s1163_s20 + $0x48] sm:$0xff] %v730_v6  ;;  %757 = vpow2.f32 %v354_v59 }
  0x76   : > { %v734_v13 = vpop.eup %733  ;;  %478 = vst [vmem:[%s1163_s20 + $0x50] sm:$0xff] %v732_v10  ;;  %759 = vpow2.f32 %v356_v7 }
  0x77   : > { %v736_v15 = vpop.eup %735  ;;  %479 = vst [vmem:[%s1163_s20 + $0x58] sm:$0xff] %v734_v13  ;;  %761 = vpow2.f32 %v358_v4 }
  0x78   : > { %v738_v17 = vpop.eup %737  ;;  %480 = vst [vmem:[%s1163_s20 + $0x60] sm:$0xff] %v736_v15  ;;  %763 = vpow2.f32 %v360_v8 }
  0x79   : > { %v740_v19 = vpop.eup %739  ;;  %481 = vst [vmem:[%s1163_s20 + $0x68] sm:$0xff] %v738_v17  ;;  %765 = vpow2.f32 %v362_v11 }
  0x7a   : > { %v742_v21 = vpop.eup %741  ;;  %482 = vst [vmem:[%s1163_s20 + $0x70] sm:$0xff] %v740_v19  ;;  %767 = vpow2.f32 %v364_v14 }
  0x7b   : > { %v744_v22 = vpop.eup %743  ;;  %483 = vst [vmem:[%s1163_s20 + $0x78] sm:$0xff] %v742_v21  ;;  %769 = vpow2.f32 %v366_v16 }
  0x7c   : > { %v746_v23 = vpop.eup %745  ;;  %v388_v24 = vadd.f32 1.0, %v744_v22  ;;  %771 = vpow2.f32 %v368_v18 }
  0x7d   : > { %v748_v25 = vpop.eup %747  ;;  %v389_v26 = vadd.f32 1.0, %v746_v23  ;;  %773 = vpow2.f32 %v370_v20 }
  0x7e   : > { %v750_v27 = vpop.eup %749  ;;  %775 = vrcp.f32 %v388_v24  ;;  %v390_v28 = vadd.f32 1.0, %v748_v25 }
  0x7f   : > { %v752_v29 = vpop.eup %751  ;;  %777 = vrcp.f32 %v389_v26  ;;  %v391_v30 = vadd.f32 1.0, %v750_v27 }
  0x80   : > { %v754_v31 = vpop.eup %753  ;;  %779 = vrcp.f32 %v390_v28  ;;  %v392_v32 = vadd.f32 1.0, %v752_v29 }
  0x81   : > { %v756_v33 = vpop.eup %755  ;;  %781 = vrcp.f32 %v391_v30  ;;  %v393_v34 = vadd.f32 1.0, %v754_v31 }
  0x82   : > { %v758_v35 = vpop.eup %757  ;;  %783 = vrcp.f32 %v392_v32  ;;  %v394_v36 = vadd.f32 1.0, %v756_v33 }
  0x83   : > { %v760_v37 = vpop.eup %759  ;;  %785 = vrcp.f32 %v393_v34  ;;  %v395_v38 = vadd.f32 1.0, %v758_v35 }
  0x84   : > { %v762_v39 = vpop.eup %761  ;;  %787 = vrcp.f32 %v394_v36  ;;  %v396_v40 = vadd.f32 1.0, %v760_v37 }
  0x85   : > { %v764_v41 = vpop.eup %763  ;;  %789 = vrcp.f32 %v395_v38  ;;  %v397_v42 = vadd.f32 1.0, %v762_v39 }
  0x86   : > { %v766_v43 = vpop.eup %765  ;;  %791 = vrcp.f32 %v396_v40  ;;  %v398_v44 = vadd.f32 1.0, %v764_v41 }
  0x87   : > { %v768_v45 = vpop.eup %767  ;;  %793 = vrcp.f32 %v397_v42  ;;  %v399_v46 = vadd.f32 1.0, %v766_v43 }
  0x88   : > { %v770_v47 = vpop.eup %769  ;;  %795 = vrcp.f32 %v398_v44  ;;  %v400_v48 = vadd.f32 1.0, %v768_v45 }
  0x89   : > { %v772_v49 = vpop.eup %771  ;;  %797 = vrcp.f32 %v399_v46  ;;  %v401_v50 = vadd.f32 1.0, %v770_v47 }
  0x8a   : > { %v774_v51 = vpop.eup %773  ;;  %799 = vrcp.f32 %v400_v48  ;;  %v402_v52 = vadd.f32 1.0, %v772_v49 }
  0x8b   : > { %v776_v53 = vpop.eup %775  ;;  %801 = vrcp.f32 %v401_v50  ;;  %v403_v54 = vadd.f32 1.0, %v774_v51 }
  0x8c   : > { %v778_v55 = vpop.eup %777  ;;  %484 = vst [vmem:[%s1163_s20 + $0x80] sm:$0xff] %v776_v53  ;;  %803 = vrcp.f32 %v402_v52 }
  0x8d   : > { %v780_v56 = vpop.eup %779  ;;  %485 = vst [vmem:[%s1163_s20 + $0x88] sm:$0xff] %v778_v55  ;;  %805 = vrcp.f32 %v403_v54 }
  0x8e   : > { %v782_v57 = vpop.eup %781  ;;  %486 = vst [vmem:[%s1163_s20 + $0x90] sm:$0xff] %v780_v56 }
  0x8f   : > { %v784_v58 = vpop.eup %783  ;;  %487 = vst [vmem:[%s1163_s20 + $0x98] sm:$0xff] %v782_v57 }
  0x90   : > { %v786_v59 = vpop.eup %785  ;;  %488 = vst [vmem:[%s1163_s20 + $0xa0] sm:$0xff] %v784_v58 }
  0x91   : > { %v788_v60 = vpop.eup %787  ;;  %489 = vst [vmem:[%s1163_s20 + $0xa8] sm:$0xff] %v786_v59 }
  0x92   : > { %v790_v61 = vpop.eup %789  ;;  %490 = vst [vmem:[%s1163_s20 + $0xb0] sm:$0xff] %v788_v60 }
  0x93   : > { %v792_v62 = vpop.eup %791  ;;  %491 = vst [vmem:[%s1163_s20 + $0xb8] sm:$0xff] %v790_v61 }
  0x94   : > { %v794_v63 = vpop.eup %793  ;;  %492 = vst [vmem:[%s1163_s20 + $0xc0] sm:$0xff] %v792_v62 }
  0x95   : > { %v796_v0 = vpop.eup %795  ;;  %493 = vst [vmem:[%s1163_s20 + $0xc8] sm:$0xff] %v794_v63 }
  0x96   : > { %v798_v2 = vpop.eup %797  ;;  %494 = vst [vmem:[%s1163_s20 + $0xd0] sm:$0xff] %v796_v0 }
  0x97   : > { %v800_v7 = vpop.eup %799  ;;  %495 = vst [vmem:[%s1163_s20 + $0xd8] sm:$0xff] %v798_v2 }
  0x98   : > { %v802_v1 = vpop.eup %801  ;;  %496 = vst [vmem:[%s1163_s20 + $0xe0] sm:$0xff] %v800_v7 }
  0x99   : > { %v804_v3 = vpop.eup %803  ;;  %497 = vst [vmem:[%s1163_s20 + $0xe8] sm:$0xff] %v802_v1 }
  0x9a   : > { %v806_v4 = vpop.eup %805  ;;  %498 = vst [vmem:[%s1163_s20 + $0xf0] sm:$0xff] %v804_v3 }
  0x9b   : > { %499 = vst [vmem:[%s1163_s20 + $0xf8] sm:$0xff] %v806_v4 }
  0x9c   : > { %859 = shalt.err (!%p856_p2)
}
  0x9d   : > { %s860_s30 = scalar_lea.hbm %s1215_s25, 4096  ;;  %s864_s14 = scalar_lea.hbm %s1264_s2, 16384 }
  0x9e   : > { %p861_p3 = scmp.ne.s32.totalorder %s1215_s25, %s860_s30  ;;  %p865_p4 = scmp.lt.s32.totalorder %s1215_s25, %s1264_s2 }
  0x9f   : > { %p866_p6 = scmp.lt.s32.totalorder %s864_s14, %s860_s30 }
  0xa0   : > { %p862_p7 = pnand %p861_p3, %p1279_p13 }
  0xa1   : > { %p867_p11 = por %p866_p6, %p865_p4 }
  0xa2   : > { %p863_p5 = pneg %p862_p7 }
  0xa4   : > { %p868_p12 = pnand %p867_p11, %p863_p5 }
  0xa6   : > { %871 = shalt.err (!%p868_p12)
}
  0xa7   : > { %s921_s23 = smov 128   ;;  %s922_s5 = smov 8  }
  0xa8   : > { %624 = dma.vmem_to_hbm [thread:$0]  (%p1279_p13), %s1217_s8, 4096, %s1215_s25, %s501_s13, %s921_s23, %s921_s23, %s922_s5  }
  0xa9 PF: > { %p641_p0 = scmp.ge.s32.totalorder %s914_s12, 2  ;;  %s529_s20 = sand.u32 1, %s902_s9  }
  0xaa   : > { %p1280_p8 = scmp.ne.s32.totalorder %s1272_s22, 0  ;;  %s530_s7 = scalar_lea.sflag [#allocation4], %s529_s20 }
  0xac   : > { %p635_p9 = pnand %p641_p0, %p1280_p8 }
  0xae   : > { %p636_p10 = pneg %p635_p9 }
  0xb0   : > { %897 = dma.done.wait (%p636_p10), %s530_s7, 4096  }
  0xb1   : > { %899 = vsyncadd (%p636_p10), %s530_s7, 4294963200  ;;  %p16_p1 = scmp.ge.s32.totalorder %s963_s15, 6   ;;  %s1281_s9 = smov %s906_s10 }
  0xb2   : > { %s1282_s10 = smov %s910_s11  ;;  %s1283_s11 = smov %s975_s18 }
  0xb3   : > { %s1284_s12 = smov %s963_s15  ;;  %18 = sbr.rel (!%p16_p1) target bundleno = 6 (0x6), region = 78 }
  0xb8   :  { %535 = vsyncpa [#allocation3], 1 }
  0xb9   :  { %537 = vsyncpa [#allocation3 + $0x1], 1 }
  0xba   :  { %538 = vsyncpa [#allocation4], 1 }
  0xbb   :  { %540 = vsyncpa [#allocation4 + $0x1], 1 }
  0xbc   :  { %541 = vsyncpa [#allocation5], 1 }
  0xbd   :  { %543 = vsyncpa [#allocation5 + $0x1], 1 }

</bundles_post_ra>
